<compile_context>
chip_gen: v7x
topology: tpu7x:2x2x1
jax: 0.10.0
libtpu: 0.0.40
codegen_flags: <defaults>
</compile_context>

<pallas_src>
import jax
import jax.numpy as jnp
import numpy as np
from jax.experimental import pallas as pl
from jax.experimental.pallas import tpu as pltpu

# ---- Model hyper-parameters (synthetic, shapes follow the module __init__) ----
EMBEDS_SIZE = 20
NON_EMB_OUT = 196
HIDDEN = 50
ITEMS_SIZE = 64           # items.shape[0]            (synthetic)
CATEGORIES_SIZE = 16      # items_categories.shape[0] (synthetic)
SHOPS_SIZE = 12           # shops.shape[0]            (synthetic)
NON_EMB_F = 13            # non_embedding_features_num (synthetic)


def _embedding_net_kernel(
    idx_ref,        # (3, TB)   int32 -- indices already offset into stacked vocab
    rest_ref,       # (F, TB)   f32   -- non-embedding features (feature-major)
    t_hi_ref,       # (50, V_PAD) bf16 -- hi part of (relu(E) @ Wh_emb)^T
    t_lo_ref,       # (50, V_PAD) bf16 -- lo (residual) part
    w_rest_ref,     # (196, F)  f32
    b_rest_ref,     # (196, 1)  f32
    wh_rest_ref,    # (50, 196) f32
    b_h_ref,        # (50, 1)   f32
    w_final_ref,    # (50, 1)   f32
    b_final_ref,    # (1, 1)    f32
    o_ref,          # (1, TB)   f32 -- lane-dense output row
):
    tb = o_ref.shape[1]
    v_pad = t_hi_ref.shape[1]

    idx = idx_ref[...]                                               # (3, TB)
    vocab = jax.lax.broadcasted_iota(jnp.int32, (v_pad, tb), 0)      # (V, TB)
    # stacked one-hot over [items | categories | shops] (disjoint index ranges),
    # emitted directly in bf16 (0/1 is exact in bf16).
    onehot = ((vocab == idx[0:1, :]) |
              (vocab == idx[1:2, :]) |
              (vocab == idx[2:3, :])).astype(jnp.bfloat16)           # (V, TB)

    # Sum of the three relu(embedding) @ Wh contributions as bf16 matmuls.
    # hi/lo split keeps ~f32 accuracy while using the 1-pass bf16 MXU rate.
    emb_h = (jnp.dot(t_hi_ref[...], onehot, preferred_element_type=jnp.float32)
             + jnp.dot(t_lo_ref[...], onehot,
                       preferred_element_type=jnp.float32))          # (50, TB)

    rest_out = jnp.dot(w_rest_ref[...], rest_ref[...],
                       preferred_element_type=jnp.float32) + b_rest_ref[...]
    rest_out = jnp.maximum(rest_out, 0.0)                            # (196, TB)

    h = (emb_h
         + jnp.dot(wh_rest_ref[...], rest_out,
                   preferred_element_type=jnp.float32)
         + b_h_ref[...])
    h = jnp.maximum(h, 0.0)                                          # (50, TB)

    # Final (1,50)@(50,TB) done on VPU (broadcast mul) + XLU (sublane reduce):
    # keeps the M=1 matmul off the MXU (no weight push/drain per grid step).
    o_ref[...] = (jnp.sum(w_final_ref[...] * h, axis=0, keepdims=True)
                  + b_final_ref[...])                                # (1, TB)


def _pick_tile_and_padded_batch(batch):
    """Largest lane-aligned tile such that there are always >= 2 tiles.

    >=2 tiles lets the "parallel" grid axis shard over both TensorCores on
    v7x; big tiles amortize the ~0.35 us per-grid-step pipeline overhead.
    """
    for tb in (2048, 1024, 512, 256, 128):
        if batch >= 2 * tb:
            n_tiles = -(-batch // tb)          # ceil
            return tb, n_tiles * tb
    return 128, 256                            # tiny batch: 2 tiles of 128


def prepare_params(params):
    """Precompute kernel-ready weights once per weight set (hoisted out of the
    per-call forward path)."""
    (emb_items, emb_cats, emb_shops,
     w_rest, b_rest, wh_item, wh_cat, wh_shop, wh_rest, b_h,
     w_final, b_final) = params

    vi, vc, vs = emb_items.shape[0], emb_cats.shape[0], emb_shops.shape[0]
    v_total = vi + vc + vs
    v_pad = ((v_total + 127) // 128) * 128

    hi = jax.lax.Precision.HIGHEST
    relu = lambda a: jnp.maximum(a, 0.0)
    # relu(table) @ Wh, stacked over [items, cats, shops]. Exact because one-hot
    # row selection commutes with relu and with right-multiplication.
    t_emb = jnp.concatenate([
        jnp.dot(relu(emb_items), wh_item, precision=hi),
        jnp.dot(relu(emb_cats),  wh_cat,  precision=hi),
        jnp.dot(relu(emb_shops), wh_shop, precision=hi),
    ], axis=0)                                                  # (v_total, 50)
    t_emb = jnp.pad(t_emb, ((0, v_pad - v_total), (0, 0)))      # (v_pad, 50)
    t_emb_t = t_emb.T.astype(jnp.float32)                       # (50, v_pad)

    # bf16 hi/lo split: t_hi + t_lo ~= t_emb_t to ~2^-16 relative accuracy.
    t_hi = t_emb_t.astype(jnp.bfloat16)
    t_lo = (t_emb_t - t_hi.astype(jnp.float32)).astype(jnp.bfloat16)

    offsets = jnp.array([[0], [vi], [vi + vc]], dtype=jnp.int32)     # (3, 1)

    return (offsets,
            t_hi, t_lo,                       # (50, v_pad) bf16 x2
            w_rest.T,                         # (196, F)
            b_rest.T,                         # (196, 1)
            wh_rest.T,                        # (50, 196)
            b_h.T,                            # (50, 1)
            w_final,                          # (50, 1)  -- used as VPU column
            b_final)                          # (1, 1)


@jax.jit
def embedding_net_forward(x, prepared):
    (offsets, t_hi, t_lo, w_rest_t, b_rest_c, wh_rest_t, b_h_c,
     w_final_col, b_final_c) = prepared

    batch = x.shape[0]
    n_feat = x.shape[1] - 3
    v_pad = t_hi.shape[1]

    tb, b_pad = _pick_tile_and_padded_batch(batch)
    num_tiles = b_pad // tb

    # Feature-major activations: batch on the lane (last) dim.
    # TODO(synk): if the caller can supply x feature-major, this transposed
    # copy (an extra HBM read+write pass) disappears entirely.
    idx_t = x[:, :3].astype(jnp.int32).T + offsets                   # (3, B)
    rest_t = x[:, 3:].T                                              # (F, B)
    pad = b_pad - batch
    if pad:
        # zero-pad batch columns (index 0 is valid; results are sliced off)
        idx_t = jnp.pad(idx_t, ((0, 0), (0, pad)))
        rest_t = jnp.pad(rest_t, ((0, 0), (0, pad)))

    weights = (t_hi, t_lo, w_rest_t, b_rest_c, wh_rest_t, b_h_c,
               w_final_col, b_final_c)

    def full_block(a):
        # whole array, same (resident) block at every grid step
        return pl.BlockSpec(a.shape, lambda i: (0, 0))

    flops = 2 * b_pad * (2 * v_pad * HIDDEN + n_feat * NON_EMB_OUT
                         + NON_EMB_OUT * HIDDEN + HIDDEN)
    bytes_accessed = int(idx_t.size * 4 + rest_t.size * 4 + b_pad * 4
                         + sum(int(w.size) * w.dtype.itemsize for w in weights))
    cost = pl.CostEstimate(flops=flops, transcendentals=0,
                           bytes_accessed=bytes_accessed)

    out_row = pl.pallas_call(
        _embedding_net_kernel,
        out_shape=jax.ShapeDtypeStruct((1, b_pad), jnp.float32),
        grid_spec=pltpu.PrefetchScalarGridSpec(
            num_scalar_prefetch=0,
            grid=(num_tiles,),
            in_specs=[
                pl.BlockSpec((3, tb), lambda i: (0, i)),        # indices
                pl.BlockSpec((n_feat, tb), lambda i: (0, i)),   # dense features
            ] + [full_block(w) for w in weights],
            out_specs=pl.BlockSpec((1, tb), lambda i: (0, i)),  # lane-dense row
        ),
        compiler_params=pltpu.CompilerParams(
            dimension_semantics=("parallel",),
            vmem_limit_bytes=32 * 1024 * 1024,   # headroom on v5e's 16 MiB default
        ),
        cost_estimate=cost,
    )(idx_t, rest_t, *weights)

    return out_row[:, :batch].reshape(batch, 1)


def init_params(key):
    ks = jax.random.split(key, 12)
    concat_in = EMBEDS_SIZE * 3 + NON_EMB_OUT

    def lin(kw, kb, fan_in, fan_out):
        bound = 1.0 / np.sqrt(fan_in)
        w = jax.random.uniform(kw, (fan_in, fan_out), jnp.float32, -bound, bound)
        b = jax.random.uniform(kb, (1, fan_out), jnp.float32, -bound, bound)
        return w, b

    emb_items = jax.random.normal(ks[0], (ITEMS_SIZE, EMBEDS_SIZE), jnp.float32)
    emb_cats = jax.random.normal(ks[1], (CATEGORIES_SIZE, EMBEDS_SIZE), jnp.float32)
    emb_shops = jax.random.normal(ks[2], (SHOPS_SIZE, EMBEDS_SIZE), jnp.float32)

    w_rest, b_rest = lin(ks[3], ks[4], NON_EMB_F, NON_EMB_OUT)
    w_hidden, b_h = lin(ks[5], ks[6], concat_in, HIDDEN)
    w_final, b_final = lin(ks[7], ks[8], HIDDEN, 1)

    # split hidden weight rows to match the concat order: [item, cat, shop, rest]
    wh_item = w_hidden[0:EMBEDS_SIZE]
    wh_cat = w_hidden[EMBEDS_SIZE:2 * EMBEDS_SIZE]
    wh_shop = w_hidden[2 * EMBEDS_SIZE:3 * EMBEDS_SIZE]
    wh_rest = w_hidden[3 * EMBEDS_SIZE:]

    return (emb_items, emb_cats, emb_shops,
            w_rest, b_rest, wh_item, wh_cat, wh_shop, wh_rest, b_h,
            w_final, b_final)


def reference_forward(x, params):
    (emb_items, emb_cats, emb_shops,
     w_rest, b_rest, wh_item, wh_cat, wh_shop, wh_rest, b_h,
     w_final, b_final) = params
    item_e = jax.nn.relu(emb_items[x[:, 0].astype(jnp.int32)])
    cat_e = jax.nn.relu(emb_cats[x[:, 1].astype(jnp.int32)])
    shop_e = jax.nn.relu(emb_shops[x[:, 2].astype(jnp.int32)])
    rest_out = jax.nn.relu(x[:, 3:] @ w_rest + b_rest)
    concat = jnp.concatenate([item_e, cat_e, shop_e, rest_out], axis=1)
    w_hidden = jnp.concatenate([wh_item, wh_cat, wh_shop, wh_rest], axis=0)
    h = jax.nn.relu(concat @ w_hidden + b_h)
    return h @ w_final + b_final


if __name__ == "__main__":
    key = jax.random.PRNGKey(0)
    k_params, k_i, k_c, k_s, k_r = jax.random.split(key, 5)

    params = init_params(k_params)
    prepared = prepare_params(params)   # hoisted weight precompute (once)

    B = 32
    item_idx = jax.random.randint(k_i, (B, 1), 0, ITEMS_SIZE).astype(jnp.float32)
    cat_idx = jax.random.randint(k_c, (B, 1), 0, CATEGORIES_SIZE).astype(jnp.float32)
    shop_idx = jax.random.randint(k_s, (B, 1), 0, SHOPS_SIZE).astype(jnp.float32)
    rest = jax.random.normal(k_r, (B, NON_EMB_F), jnp.float32)
    x = jnp.concatenate([item_idx, cat_idx, shop_idx, rest], axis=1)  # [B, 16]

    out = embedding_net_forward(x, prepared)
    out = jax.block_until_ready(out)

    ref = reference_forward(x, params)
    np.testing.assert_allclose(np.asarray(out), np.asarray(ref),
                               rtol=1e-4, atol=1e-4)

    print("KERNEL_OK")
</pallas_src>

<mosaic_0001>
module attributes {stable_mosaic.version = 11 : i64} {
  func.func @_embedding_net_kernel(%arg0: i32, %arg1: memref<3x128xi32, #tpu.memory_space<vmem>>, %arg2: memref<13x128xf32, #tpu.memory_space<vmem>>, %arg3: memref<50x128xbf16, #tpu.memory_space<vmem>>, %arg4: memref<50x128xbf16, #tpu.memory_space<vmem>>, %arg5: memref<196x13xf32, #tpu.memory_space<vmem>>, %arg6: memref<196x1xf32, #tpu.memory_space<vmem>>, %arg7: memref<50x196xf32, #tpu.memory_space<vmem>>, %arg8: memref<50x1xf32, #tpu.memory_space<vmem>>, %arg9: memref<50x1xf32, #tpu.memory_space<vmem>>, %arg10: memref<1x1xf32, #tpu.memory_space<vmem>>, %arg11: memref<1x128xf32, #tpu.memory_space<vmem>>) attributes {dimension_semantics = [#tpu.dimension_semantics<parallel>], iteration_bounds = array<i64: 2>, scalar_prefetch = 0 : i64, scratch_operands = 0 : i64, tpu.core_type = #tpu.core_type<tc>, window_params = [{transform_indices = @transform_0, window_bounds = array<i64: 3, 128>}, {transform_indices = @transform_1, window_bounds = array<i64: 13, 128>}, {pipeline_mode = #tpu.pipeline_mode<synchronous>, transform_indices = @transform_2, window_bounds = array<i64: 50, 128>}, {pipeline_mode = #tpu.pipeline_mode<synchronous>, transform_indices = @transform_3, window_bounds = array<i64: 50, 128>}, {pipeline_mode = #tpu.pipeline_mode<synchronous>, transform_indices = @transform_4, window_bounds = array<i64: 196, 13>}, {pipeline_mode = #tpu.pipeline_mode<synchronous>, transform_indices = @transform_5, window_bounds = array<i64: 196, 1>}, {pipeline_mode = #tpu.pipeline_mode<synchronous>, transform_indices = @transform_6, window_bounds = array<i64: 50, 196>}, {pipeline_mode = #tpu.pipeline_mode<synchronous>, transform_indices = @transform_7, window_bounds = array<i64: 50, 1>}, {pipeline_mode = #tpu.pipeline_mode<synchronous>, transform_indices = @transform_8, window_bounds = array<i64: 50, 1>}, {pipeline_mode = #tpu.pipeline_mode<synchronous>, transform_indices = @transform_9, window_bounds = array<i64: 1, 1>}, {transform_indices = @transform_10, window_bounds = array<i64: 1, 128>}]} {
    %c0 = arith.constant 0 : index
    %c0_0 = arith.constant 0 : index
    %0 = vector.load %arg1[%c0, %c0_0] : memref<3x128xi32, #tpu.memory_space<vmem>>, vector<3x128xi32>
    %1 = tpu.iota {dimensions = array<i32: 0>} : vector<128x128xi32>
    %2 = vector.extract_strided_slice %0 {offsets = [0, 0], sizes = [1, 128], strides = [1, 1]} : vector<3x128xi32> to vector<1x128xi32>
    %3 = vector.broadcast %2 : vector<1x128xi32> to vector<128x128xi32>
    %4 = arith.cmpi eq, %1, %3 : vector<128x128xi32>
    %5 = vector.extract_strided_slice %0 {offsets = [1, 0], sizes = [1, 128], strides = [1, 1]} : vector<3x128xi32> to vector<1x128xi32>
    %6 = vector.broadcast %5 : vector<1x128xi32> to vector<128x128xi32>
    %7 = arith.cmpi eq, %1, %6 : vector<128x128xi32>
    %8 = arith.ori %4, %7 : vector<128x128xi1>
    %9 = vector.extract_strided_slice %0 {offsets = [2, 0], sizes = [1, 128], strides = [1, 1]} : vector<3x128xi32> to vector<1x128xi32>
    %10 = vector.broadcast %9 : vector<1x128xi32> to vector<128x128xi32>
    %11 = arith.cmpi eq, %1, %10 : vector<128x128xi32>
    %12 = arith.ori %8, %11 : vector<128x128xi1>
    %13 = arith.extui %12 : vector<128x128xi1> to vector<128x128xi32>
    %14 = arith.sitofp %13 : vector<128x128xi32> to vector<128x128xf32>
    %15 = arith.truncf %14 : vector<128x128xf32> to vector<128x128xbf16>
    %c0_1 = arith.constant 0 : index
    %c0_2 = arith.constant 0 : index
    %16 = vector.load %arg3[%c0_1, %c0_2] : memref<50x128xbf16, #tpu.memory_space<vmem>>, vector<50x128xbf16>
    %cst = arith.constant dense<0.000000e+00> : vector<50x128xf32>
    %17 = tpu.matmul %16, %15, %cst {dimension_numbers = #tpu.dot_dimension_numbers<[1], [0], [0], [1], [0, 0, 1, 1], [], []>} : vector<50x128xbf16>, vector<128x128xbf16>, vector<50x128xf32> -> vector<50x128xf32>
    %c0_3 = arith.constant 0 : index
    %c0_4 = arith.constant 0 : index
    %18 = vector.load %arg4[%c0_3, %c0_4] : memref<50x128xbf16, #tpu.memory_space<vmem>>, vector<50x128xbf16>
    %cst_5 = arith.constant dense<0.000000e+00> : vector<50x128xf32>
    %19 = tpu.matmul %18, %15, %cst_5 {dimension_numbers = #tpu.dot_dimension_numbers<[1], [0], [0], [1], [0, 0, 1, 1], [], []>} : vector<50x128xbf16>, vector<128x128xbf16>, vector<50x128xf32> -> vector<50x128xf32>
    %20 = arith.addf %17, %19 : vector<50x128xf32>
    %c0_6 = arith.constant 0 : index
    %c0_7 = arith.constant 0 : index
    %21 = vector.load %arg5[%c0_6, %c0_7] : memref<196x13xf32, #tpu.memory_space<vmem>>, vector<196x13xf32>
    %c0_8 = arith.constant 0 : index
    %c0_9 = arith.constant 0 : index
    %22 = vector.load %arg2[%c0_8, %c0_9] : memref<13x128xf32, #tpu.memory_space<vmem>>, vector<13x128xf32>
    %cst_10 = arith.constant dense<0.000000e+00> : vector<196x128xf32>
    %23 = tpu.matmul %21, %22, %cst_10 {dimension_numbers = #tpu.dot_dimension_numbers<[1], [0], [0], [1], [0, 0, 1, 1], [], []>} : vector<196x13xf32>, vector<13x128xf32>, vector<196x128xf32> -> vector<196x128xf32>
    %c0_11 = arith.constant 0 : index
    %c0_12 = arith.constant 0 : index
    %24 = vector.load %arg6[%c0_11, %c0_12] : memref<196x1xf32, #tpu.memory_space<vmem>>, vector<196x1xf32>
    %25 = vector.broadcast %24 : vector<196x1xf32> to vector<196x128xf32>
    %26 = arith.addf %23, %25 : vector<196x128xf32>
    %cst_13 = arith.constant 0.000000e+00 : f32
    %27 = vector.broadcast %cst_13 : f32 to vector<196x128xf32>
    %28 = arith.maximumf %26, %27 : vector<196x128xf32>
    %c0_14 = arith.constant 0 : index
    %c0_15 = arith.constant 0 : index
    %29 = vector.load %arg7[%c0_14, %c0_15] : memref<50x196xf32, #tpu.memory_space<vmem>>, vector<50x196xf32>
    %cst_16 = arith.constant dense<0.000000e+00> : vector<50x128xf32>
    %30 = tpu.matmul %29, %28, %cst_16 {dimension_numbers = #tpu.dot_dimension_numbers<[1], [0], [0], [1], [0, 0, 1, 1], [], []>} : vector<50x196xf32>, vector<196x128xf32>, vector<50x128xf32> -> vector<50x128xf32>
    %31 = arith.addf %20, %30 : vector<50x128xf32>
    %c0_17 = arith.constant 0 : index
    %c0_18 = arith.constant 0 : index
    %32 = vector.load %arg8[%c0_17, %c0_18] : memref<50x1xf32, #tpu.memory_space<vmem>>, vector<50x1xf32>
    %33 = vector.broadcast %32 : vector<50x1xf32> to vector<50x128xf32>
    %34 = arith.addf %31, %33 : vector<50x128xf32>
    %cst_19 = arith.constant 0.000000e+00 : f32
    %35 = vector.broadcast %cst_19 : f32 to vector<50x128xf32>
    %36 = arith.maximumf %34, %35 : vector<50x128xf32>
    %c0_20 = arith.constant 0 : index
    %c0_21 = arith.constant 0 : index
    %37 = vector.load %arg9[%c0_20, %c0_21] : memref<50x1xf32, #tpu.memory_space<vmem>>, vector<50x1xf32>
    %38 = vector.broadcast %37 : vector<50x1xf32> to vector<50x128xf32>
    %39 = arith.mulf %38, %36 : vector<50x128xf32>
    %cst_22 = arith.constant dense<0.000000e+00> : vector<128xf32>
    %40 = vector.multi_reduction <add>, %39, %cst_22 [0] : vector<50x128xf32> to vector<128xf32>
    %41 = vector.shape_cast %40 : vector<128xf32> to vector<1x128xf32>
    %c0_23 = arith.constant 0 : index
    %c0_24 = arith.constant 0 : index
    %42 = vector.load %arg10[%c0_23, %c0_24] : memref<1x1xf32, #tpu.memory_space<vmem>>, vector<1x1xf32>
    %43 = vector.broadcast %42 : vector<1x1xf32> to vector<1x128xf32>
    %44 = arith.addf %41, %43 : vector<1x128xf32>
    %c0_25 = arith.constant 0 : index
    %c0_26 = arith.constant 0 : index
    %45 = vector.load %arg11[%c0_25, %c0_26] : memref<1x128xf32, #tpu.memory_space<vmem>>, vector<1x128xf32>
    tpu.vector_store %arg11[%c0_25, %c0_26], %44 {strides = array<i32>} : memref<1x128xf32, #tpu.memory_space<vmem>>, vector<1x128xf32>,
    return
  }
  func.func @transform_0(%arg0: i32) -> (i32, i32) {
    %c0_i32 = arith.constant 0 : i32
    %c0_i32_0 = arith.constant 0 : i32
    return %c0_i32, %arg0 : i32, i32
  }
  func.func @transform_1(%arg0: i32) -> (i32, i32) {
    %c0_i32 = arith.constant 0 : i32
    %c0_i32_0 = arith.constant 0 : i32
    return %c0_i32, %arg0 : i32, i32
  }
  func.func @transform_2(%arg0: i32) -> (i32, i32) {
    %c0_i32 = arith.constant 0 : i32
    %c0_i32_0 = arith.constant 0 : i32
    %c0_i32_1 = arith.constant 0 : i32
    return %c0_i32, %c0_i32_0 : i32, i32
  }
  func.func @transform_3(%arg0: i32) -> (i32, i32) {
    %c0_i32 = arith.constant 0 : i32
    %c0_i32_0 = arith.constant 0 : i32
    %c0_i32_1 = arith.constant 0 : i32
    return %c0_i32, %c0_i32_0 : i32, i32
  }
  func.func @transform_4(%arg0: i32) -> (i32, i32) {
    %c0_i32 = arith.constant 0 : i32
    %c0_i32_0 = arith.constant 0 : i32
    %c0_i32_1 = arith.constant 0 : i32
    return %c0_i32, %c0_i32_0 : i32, i32
  }
  func.func @transform_5(%arg0: i32) -> (i32, i32) {
    %c0_i32 = arith.constant 0 : i32
    %c0_i32_0 = arith.constant 0 : i32
    %c0_i32_1 = arith.constant 0 : i32
    return %c0_i32, %c0_i32_0 : i32, i32
  }
  func.func @transform_6(%arg0: i32) -> (i32, i32) {
    %c0_i32 = arith.constant 0 : i32
    %c0_i32_0 = arith.constant 0 : i32
    %c0_i32_1 = arith.constant 0 : i32
    return %c0_i32, %c0_i32_0 : i32, i32
  }
  func.func @transform_7(%arg0: i32) -> (i32, i32) {
    %c0_i32 = arith.constant 0 : i32
    %c0_i32_0 = arith.constant 0 : i32
    %c0_i32_1 = arith.constant 0 : i32
    return %c0_i32, %c0_i32_0 : i32, i32
  }
  func.func @transform_8(%arg0: i32) -> (i32, i32) {
    %c0_i32 = arith.constant 0 : i32
    %c0_i32_0 = arith.constant 0 : i32
    %c0_i32_1 = arith.constant 0 : i32
    return %c0_i32, %c0_i32_0 : i32, i32
  }
  func.func @transform_9(%arg0: i32) -> (i32, i32) {
    %c0_i32 = arith.constant 0 : i32
    %c0_i32_0 = arith.constant 0 : i32
    %c0_i32_1 = arith.constant 0 : i32
    return %c0_i32, %c0_i32_0 : i32, i32
  }
  func.func @transform_10(%arg0: i32) -> (i32, i32) {
    %c0_i32 = arith.constant 0 : i32
    %c0_i32_0 = arith.constant 0 : i32
    return %c0_i32, %arg0 : i32, i32
  }
}

</mosaic_0001>

<bundles_post_ra>
// kernel: embedding_net_forward.1
= control target key start
LH: loop header
LB: loop body
LE: loop exit
PB: predicated region body
PF: predicated region fallthrough
CT: control target
= control target key end

     0   :  { %s2741_s0 = inlined_call_operand.vmem [shape: s32[3,256], index: 0, kind: input, shape index: {}]   ;;  %s2742_s1 = inlined_call_operand.vmem [shape: f32[13,256], index: 1, kind: input, shape index: {}]   ;;  %s2743_s2 = inlined_call_operand.vmem [shape: bf16[50,128], index: 2, kind: input, shape index: {}]   ;;  %s2744_s3 = inlined_call_operand.vmem [shape: bf16[50,128], index: 3, kind: input, shape index: {}]   ;;  %s2745_s4 = inlined_call_operand.vmem [shape: f32[196,13], index: 4, kind: input, shape index: {}]   ;;  %s2746_s5 = inlined_call_operand.vmem [shape: f32[196,1], index: 5, kind: input, shape index: {}]   ;;  %s2747_s6 = inlined_call_operand.vmem [shape: f32[50,196], index: 6, kind: input, shape index: {}]   ;;  %s2748_s7 = inlined_call_operand.vmem [shape: f32[50,1], index: 7, kind: input, shape index: {}]   ;;  %s2749_s8 = inlined_call_operand.vmem [shape: f32[50,1], index: 8, kind: input, shape index: {}]   ;;  %s2750_s9 = inlined_call_operand.<no memory space> [shape: f32[1,1], index: 9, kind: input, shape index: {}]   ;;  %s2751_s10 = inlined_call_operand.vmem [shape: f32[1,256], index: 10, kind: output, shape index: {}]  }
   0x1   :  { %v15_v0 = vstv %s2750_s9 }
   0x2   :  { %16 = vst [vmem:[#allocation2] sm:$0x1] %v15_v0 }
   0x3   :  { %s2022_s15 = smov 0   ;;  %s2024_s16 = smov 0  }
   0x4   :  { %s2026_s17 = smov 0  }
   0x5 LB: > { %s1565_s9 = sadd.s32 4294967295, %s1956_s17   ;;  %s2039_s18 = sadd.s32 1, %s1956_s17   ;;  %s1956_s17 = sphi %s2026_s17, %s2808_s17   ;;  %s1952_s16 = sphi %s2024_s16, %s2807_s16   ;;  %s1948_s15 = sphi %s2022_s15, %s2806_s15  }
   0x6   : > { %s52_s19 = ssub.s32 %s1956_s17, %s2039_s18  ;;  %s55_s20 = sadd.s32 1, %s1952_s16 }
   0x7   : > { %p53_p0 = scmp.eq.s32.totalorder %s52_s19, 0  ;;  %p62_p1 = scmp.ne.s32.totalorder %s1952_s16, %s1948_s15 }
   0x8   : > { %p63_p2 = scmp.eq.s32.totalorder %s1956_s17, 0  ;;  %p1568_p4 = scmp.ge.s32.totalorder %s1956_s17, 2 }
   0x9   : > { %s2048_s21 = scalar_select %p53_p0, %s1952_s16, %s55_s20  }
   0xa   : > { %p64_p3 = por %p63_p2, %p62_p1  ;;  %306 = sbr.rel (%p1568_p4) target bundleno = 24 (0x18), region = 48 }
  0x11   : > { %316 = sbr.rel (!%p64_p3) target bundleno = 24 (0x18), region = 56  ;;  %s318_s22 = sand.u32 (%p64_p3), 1, %s1952_s16  }
  0x12   : > { %s1570_s23 = sshll.u32 (%p64_p3), %s1956_s17, 3  ;;  %s1569_s24 = sshll.u32 (%p64_p3), %s318_s22, 4 }
  0x13   : > { %s322_s27 = scalar_lea.vmem (%p64_p3), %s2742_s1, %s1570_s23  ;;  %s320_s28 = scalar_lea.vmem (%p64_p3), [#allocation3], %s1569_s24 }
  0x14   : > { %v352_v1 = vld [vmem:[%s322_s27] sm:$0xff] (%p64_p3)  ;;  %v354_v2 = vld [vmem:[%s322_s27 + $0x10] sm:$0xff] (%p64_p3) }
  0x15   : > { %353 = vst [vmem:[%s320_s28] sm:$0xff] (%p64_p3), %v352_v1  ;;  %355 = vst [vmem:[%s320_s28 + $0x8] sm:$0xff] (%p64_p3), %v354_v2 }
  0x18 PF: > { %p1571_p5 = scmp.ge.s32.totalorder %s1956_s17, 1  ;;  %p360_p6 = scmp.lt.s32.totalorder %s1956_s17, 3 }
  0x1a   : > { %p361_p7 = pnand %p1571_p5, %p360_p6 }
  0x1b   : > { %p406_p8 = scmp.lt.s32.totalorder (!%p361_p7), %s1565_s9, 1  ;;  %v415_v3 = vlaneseq (!%p361_p7)  ;;  %s367_s29 = sand.u32 (!%p361_p7), 1, %s1948_s15   ;;  %v1958_v4 = vmov (!%p361_p7), 0.0|0.0   ;;  %vm1003_vm0 = vcmask (!%p361_p7), 1044480   ;;  %vm2753_vm1 = vmmov (!%p361_p7), 0   ;;  %v1926_v17 = vld [vmem:[%s2744_s3] sm:$0xff] (!%p361_p7)  }
  0x1c   : > { %364 = sbr.rel (%p361_p7) target bundleno = 678 (0x2a6), region = 94  ;;  %1884 = vmatprep.subr.bf16.mxu1 (!%p361_p7), %v1958_v4  ;;  %s1572_s30 = sshll.u32 (!%p361_p7), %s367_s29, 4  ;;  %v1960_v6 = vmov (!%p361_p7), 0.0   ;;  %v1961_v7 = vmov (!%p361_p7), 0   ;;  %vm1962_vm2 = vmmov (!%p361_p7), 1   ;;  %v2762_v14 = vmov (!%p361_p7), 0  ;;  %1733 = vmatprep.mubr.bf16.mxu0 (!%p361_p7), %v1926_v17 }
  0x1d   : > { %v2066_v5 = vshrl.u32 (!%p361_p7), %v415_v3, 7  ;;  %1787 = vmatprep.mubr.msk.f32.mxu1 (!%p361_p7), %vm2753_vm1, %v1960_v6  ;;  %1924 = vset.pattern.permute.xlu0 (!%p361_p7), %v1961_v7  ;;  %s369_s12 = scalar_lea.vmem (!%p361_p7), [#allocation3], %s1572_s30  ;;  %vm2079_vm3 = vmpackc.low (!%p361_p7), %vm1003_vm0, %vm1962_vm2  ;;  %v756_v23 = vld [vmem:[%s2745_s4 + $0x30] sm:$0xff] (!%p361_p7)  ;;  %vm2752_vm4 = vcmask (!%p361_p7), 105472   ;;  %v757_v25 = vld [vmem:[%s2745_s4 + $0x38] sm:$0xff] (!%p361_p7)  ;;  %v2768_v35 = vmov (!%p361_p7), 0 }
  0x1e   : > { %1925 = vset.pattern.permute.xlu1 (!%p361_p7), %v1961_v7  ;;  %v775_v11 = vld [vmem:[%s369_s12] sm:$0xff] (!%p361_p7)  ;;  %v776_v13 = vld [vmem:[%s369_s12 + $0x8] sm:$0x1f] (!%p361_p7)  ;;  %v2763_v14 = vsel (!%p361_p7), %vm2079_vm3, 4294967295, %v2762_v14  ;;  %v1963_v28 = vmov (!%p361_p7), 1.0|1.0  }
  0x1f   : > { %v434_v8 = vsub.s32 (!%p361_p7), 0, %v2066_v5  ;;  %v454_v9 = vsub.s32 (!%p361_p7), 1, %v2066_v5  ;;  %v490_v10 = vsub.s32 (!%p361_p7), 2, %v2066_v5  ;;  %v417_v12 = vadd.s32 (!%p361_p7), 8, %v2066_v5  ;;  %v758_v29 = vld [vmem:[%s2745_s4 + $0x40] sm:$0xff] (!%p361_p7)  ;;  %v759_v33 = vld [vmem:[%s2745_s4 + $0x48] sm:$0xff] (!%p361_p7) }
  0x20   : > { %v2083_v16 = vpack.c.bf16 (!%p361_p7), %v776_v13, %v775_v11  ;;  %v418_v21 = vadd.s32 (!%p361_p7), 16, %v2066_v5  ;;  %v419_v22 = vadd.s32 (!%p361_p7), 24, %v2066_v5  ;;  %v420_v24 = vadd.s32 (!%p361_p7), 32, %v2066_v5  ;;  %v760_v37 = vld [vmem:[%s2745_s4 + $0x50] sm:$0xff] (!%p361_p7)  ;;  %v777_v38 = vld [vmem:[%s2746_s5] sm:$0xff] (!%p361_p7)  ;;  %v778_v39 = vld [vmem:[%s2746_s5 + $0x8] sm:$0xff] (!%p361_p7) }
  0x21   : > { %v421_v27 = vadd.s32 (!%p361_p7), 40, %v2066_v5  ;;  %v422_v30 = vadd.s32 (!%p361_p7), 48, %v2066_v5  ;;  %v423_v32 = vadd.s32 (!%p361_p7), 56, %v2066_v5  ;;  %v424_v34 = vadd.s32 (!%p361_p7), 64, %v2066_v5  ;;  %804 = vperm.xlu0 (!%p361_p7), %1924, %v777_v38   ;;  %v779_v40 = vld [vmem:[%s2746_s5 + $0x10] sm:$0xff] (!%p361_p7)  ;;  %v761_v44 = vld [vmem:[%s2745_s4 + $0x58] sm:$0xff] (!%p361_p7) }
  0x22   : > { %1885 = vmatpush3.bf16.msk.msra.mxu1 (!%p361_p7), %vm2079_vm3, %v2083_v16  ;;  %v425_v36 = vadd.s32 (!%p361_p7), 72, %v2066_v5  ;;  %v426_v41 = vadd.s32 (!%p361_p7), 80, %v2066_v5  ;;  %814 = vperm.xlu1 (!%p361_p7), %1925, %v779_v40   ;;  %v2772_v42 = vmov (!%p361_p7), 0  ;;  %v427_v43 = vadd.s32 (!%p361_p7), 88, %v2066_v5  ;;  %v780_v45 = vld [vmem:[%s2746_s5 + $0x18] sm:$0xff] (!%p361_p7)  ;;  %v781_v46 = vld [vmem:[%s2746_s5 + $0x20] sm:$0xff] (!%p361_p7) }
  0x23   : > { %s2810_s9 = smov (!%p406_p8, %s1565_s9), 1  ;;  %1848 = vmatprep.subr.bf16.mxu1 %v1958_v4  ;;  %v428_v47 = vadd.s32 96, %v2066_v5  ;;  %v762_v48 = vld [vmem:[%s2745_s4 + $0x60] sm:$0xff]  ;;  %v429_v50 = vadd.s32 104, %v2066_v5  ;;  %v782_v51 = vld [vmem:[%s2746_s5 + $0x28] sm:$0xff]  ;;  %v783_v52 = vld [vmem:[%s2746_s5 + $0x30] sm:$0xff] }
  0x24   : > { %s1573_s11 = sshll.u32 %s2810_s9, 2  ;;  %v763_v53 = vld [vmem:[%s2745_s4 + $0x68] sm:$0xff]  ;;  %v430_v54 = vadd.s32 112, %v2066_v5  ;;  %v2779_v55 = vmov 0  ;;  %v431_v56 = vadd.s32 120, %v2066_v5  ;;  %v785_v57 = vld [vmem:[%s2746_s5 + $0x40] sm:$0xff]  ;;  %s412_s23 = scalar_lea.vmem %s2751_s10, %s2810_s9 }
  0x25   : > { %s409_s15 = scalar_lea.vmem %s2741_s0, %s1573_s11  ;;  %1788 = vmatmul.mubr.msk.f32.vlgmr.msra.gmra.mrb[0].mxu1 %vm2752_vm4, %v756_v23  ;;  %809 = vperm.xlu0 %1924, %v778_v39   ;;  %v784_v58 = vld [vmem:[%s2746_s5 + $0x38] sm:$0xff]  ;;  %v764_v59 = vld [vmem:[%s2745_s4 + $0x70] sm:$0xff]  ;;  %v786_v62 = vld [vmem:[%s2746_s5 + $0x48] sm:$0xff] }
  0x26   : > { %v414_v15 = vld [vmem:[%s409_s15] sm:$0x7]  ;;  %1790 = vmatprep.mubr.msk.f32.mxu1 %vm2753_vm1, %v1960_v6  ;;  %819 = vperm.xlu1 %1925, %v780_v45   ;;  %v787_v60 = vld [vmem:[%s2746_s5 + $0x50] sm:$0xff]  ;;  %v765_v63 = vld [vmem:[%s2745_s4 + $0x78] sm:$0xff] }
  0x27   : > { %v2090_v18 = vrot.slane %v414_v15, %v434_v8  ;;  %v2092_v19 = vrot.slane %v414_v15, %v454_v9  ;;  %v2094_v20 = vrot.slane %v414_v15, %v490_v10  ;;  %v789_v0 = vld [vmem:[%s2746_s5 + $0x60] sm:$0xff]  ;;  %v788_v1 = vld [vmem:[%s2746_s5 + $0x58] sm:$0xff]  ;;  %v1927_v7 = vld [vmem:[%s2744_s3 + $0x8] sm:$0xff]  }
  0x28   : > { %v766_v3 = vld [vmem:[%s2745_s4 + $0x80] sm:$0xff]  ;;  %v1928_v9 = vld [vmem:[%s2744_s3 + $0x10] sm:$0xff]   ;;  %v767_v11 = vld [vmem:[%s2745_s4 + $0x88] sm:$0xff] }
  0x29   : > { %vm436_vm5 = vcmp.eq.s32.totalorder %v2066_v5, %v2090_v18  ;;  %vm437_vm6 = vcmp.eq.s32.totalorder %v417_v12, %v2090_v18  ;;  %vm456_vm7 = vcmp.eq.s32.totalorder %v2066_v5, %v2092_v19  ;;  %vm457_vm8 = vcmp.eq.s32.totalorder %v417_v12, %v2092_v19  ;;  %1791 = vmatmul.mubr.msk.f32.gmra.mrb[2].mxu1 %vm2752_vm4, %v757_v25  ;;  %v791_v10 = vld [vmem:[%s2746_s5 + $0x70] sm:$0xff]  ;;  %v793_v13 = vld [vmem:[%s2746_s5 + $0x80] sm:$0xff]  ;;  %v1929_v17 = vld [vmem:[%s2744_s3 + $0x18] ss:$0 sps:$4 sm:$0x11]  }
  0x2a   : > { %vm472_vm9 = vmor %vm436_vm5, %vm456_vm7  ;;  %vm492_vm10 = vcmp.eq.s32.totalorder %v2066_v5, %v2094_v20  ;;  %vm493_vm11 = vcmp.eq.s32.totalorder %v417_v12, %v2094_v20  ;;  %vm438_vm14 = vcmp.eq.s32.totalorder %v418_v21, %v2090_v18  ;;  %vm458_vm15 = vcmp.eq.s32.totalorder %v418_v21, %v2092_v19  ;;  %1793 = vmatprep.mubr.msk.f32.mxu1 %vm2753_vm1, %v1960_v6  ;;  %v790_v12 = vld [vmem:[%s2746_s5 + $0x68] sm:$0xff]  ;;  %v768_v15 = vld [vmem:[%s2745_s4 + $0x90] sm:$0xff] }
  0x2b   : > { %vm473_vm12 = vmor %vm437_vm6, %vm457_vm8  ;;  %vm439_vm2 = vcmp.eq.s32.totalorder %v419_v22, %v2090_v18  ;;  %vm459_vm5 = vcmp.eq.s32.totalorder %v419_v22, %v2092_v19  ;;  %vm494_vm7 = vcmp.eq.s32.totalorder %v418_v21, %v2094_v20  ;;  %824 = vperm.xlu0 %1924, %v781_v46   ;;  %829 = vperm.xlu1 %1925, %v782_v51   ;;  %v769_v21 = vld [vmem:[%s2745_s4 + $0x98] sm:$0xff]  ;;  %v797_v23 = vld [vmem:[%s2746_s5 + $0xa0] sm:$0xff] }
  0x2c   : > { %vm508_vm13 = vmor %vm472_vm9, %vm492_vm10  ;;  %vm495_vm9 = vcmp.eq.s32.totalorder %v419_v22, %v2094_v20  ;;  %v794_v22 = vld [vmem:[%s2746_s5 + $0x88] sm:$0xff]  ;;  %v796_v25 = vld [vmem:[%s2746_s5 + $0x98] sm:$0xff] }
  0x2d   : > { %vm509_vm0 = vmor %vm473_vm12, %vm493_vm11  ;;  %vm440_vm12 = vcmp.eq.s32.totalorder %v420_v24, %v2090_v18  ;;  %1794 = vmatmul.mubr.msk.f32.gmra.mrb[4].mxu1 %vm2752_vm4, %v758_v29  ;;  %vm463_vm4 = vcmp.eq.s32.totalorder %v423_v32, %v2092_v19  ;;  %v799_v26 = vld [vmem:[%s2746_s5 + $0xb0] sm:$0xff]  ;;  %v798_v29 = vld [vmem:[%s2746_s5 + $0xa8] sm:$0xff] }
  0x2e   : > { %vm2125_vm6 = vmpackc.low %vm509_vm0, %vm508_vm13  ;;  %vm460_vm13 = vcmp.eq.s32.totalorder %v420_v24, %v2092_v19  ;;  %vm461_vm0 = vcmp.eq.s32.totalorder %v421_v27, %v2092_v19  ;;  %1796 = vmatprep.mubr.msk.f32.mxu1 %vm2753_vm1, %v1960_v6  ;;  %v772_v31 = vld [vmem:[%s2745_s4 + $0xb0] sm:$0xff]  ;;  %v1931_v38 = vld [vmem:[%s2743_s2 + $0x8] sm:$0xff]  }
  0x2f   : > { %1717 = vmatprep.subr.msk.bf16.mxu0 %vm2125_vm6, %v1963_v28  ;;  %vm474_vm8 = vmor %vm438_vm14, %vm458_vm15  ;;  %vm441_vm15 = vcmp.eq.s32.totalorder %v421_v27, %v2090_v18  ;;  %834 = vperm.xlu0 %1924, %v783_v52   ;;  %v1371_v39 = vld [vmem:[%s2748_s7 + $0x10] sm:$0xff]  ;;  %v1428_v45 = vld [vmem:[%s2749_s8 + $0x18] sm:$0xff] }
  0x30   : > { %1718 = vmatpush3.bf16.msk.msra.mxu0 %vm2125_vm6, %v1963_v28  ;;  %vm475_vm10 = vmor %vm439_vm2, %vm459_vm5  ;;  %vm496_vm5 = vcmp.eq.s32.totalorder %v420_v24, %v2094_v20  ;;  %839 = vperm.xlu1 %1925, %v784_v58   ;;  %v770_v24 = vld [vmem:[%s2745_s4 + $0xa0] sm:$0xff]  ;;  %v1932_v40 = vld [vmem:[%s2743_s2 + $0x10] sm:$0xff]  }
  0x31   : > { %vm510_vm11 = vmor %vm474_vm8, %vm494_vm7  ;;  %vm497_vm8 = vcmp.eq.s32.totalorder %v421_v27, %v2094_v20  ;;  %v771_v27 = vld [vmem:[%s2745_s4 + $0xa8] sm:$0xff]  ;;  %v1375_v46 = vld [vmem:[%s2748_s7 + $0x30] sm:$0x3] }
  0x32   : > { %vm511_vm14 = vmor %vm475_vm10, %vm495_vm9  ;;  %v1430_v49 = vld [vmem:[%s2749_s8 + $0x28] sm:$0xff]  ;;  %v1488_v51 = vld [vmem:[#allocation2] sm:$0x1] }
  0x33   : > { %vm2149_vm2 = vmpackc.low %vm511_vm14, %vm510_vm11  ;;  %vm442_vm11 = vcmp.eq.s32.totalorder %v422_v30, %v2090_v18  ;;  %vm443_vm14 = vcmp.eq.s32.totalorder %v423_v32, %v2090_v18  ;;  %844 = vperm.xlu0 %1924, %v785_v57   ;;  %v752_v52 = vld [vmem:[%s2745_s4 + $0x10] sm:$0xff] }
  0x34   : > { %1719 = vmatprep.subr.msk.bf16.mxu0 %vm2149_vm2, %v1963_v28  ;;  %vm476_vm7 = vmor %vm440_vm12, %vm460_vm13  ;;  %vm462_vm12 = vcmp.eq.s32.totalorder %v422_v30, %v2092_v19  ;;  %849 = vperm.xlu1 %1925, %v786_v62  }
  0x35   : > { %1720 = vmatpush3.bf16.msk.msra.mxu0 %vm2149_vm2, %v1963_v28  ;;  %vm477_vm9 = vmor %vm441_vm15, %vm461_vm0  ;;  %vm498_vm0 = vcmp.eq.s32.totalorder %v422_v30, %v2094_v20  ;;  %v801_v30 = vld [vmem:[%s2746_s5 + $0xc0] sm:$0xf] }
  0x36   : > { %vm512_vm10 = vmor %vm476_vm7, %vm496_vm5  ;;  %vm2770_vm5 = vcmask 105472  }
  0x37   : > { %vm513_vm13 = vmor %vm477_vm9, %vm497_vm8  ;;  %1797 = vmatmul.mubr.msk.f32.gmra.mrb[6].mxu1 %vm2770_vm5, %v759_v33  ;;  %vm499_vm8 = vcmp.eq.s32.totalorder %v423_v32, %v2094_v20  ;;  %vm445_vm5 = vcmp.eq.s32.totalorder %v425_v36, %v2090_v18  ;;  %854 = vperm.xlu0 %1924, %v787_v60   ;;  %v800_v32 = vld [vmem:[%s2746_s5 + $0xb8] sm:$0xff]  ;;  %v1370_v33 = vld [vmem:[%s2748_s7 + $0x8] sm:$0xff] }
  0x38   : > { %vm2173_vm15 = vmpackc.low %vm513_vm13, %vm512_vm10  ;;  %1799 = vmatprep.mubr.msk.f32.mxu1 %vm2753_vm1, %v1960_v6  ;;  %vm465_vm1 = vcmp.eq.s32.totalorder %v425_v36, %v2092_v19  ;;  %859 = vperm.xlu1 %1925, %v788_v1  }
  0x39   : > { %v2769_v35 = vsel %vm2173_vm15, 4294967295, %v2768_v35  ;;  %1721 = vmatprep.subr.msk.bf16.mxu0 %vm2173_vm15, %v1963_v28  ;;  %vm478_vm7 = vmor %vm442_vm11, %vm462_vm12  ;;  %vm444_vm11 = vcmp.eq.s32.totalorder %v424_v34, %v2090_v18  ;;  %vm464_vm12 = vcmp.eq.s32.totalorder %v424_v34, %v2092_v19 }
  0x3a   : > { %1722 = vmatpush3.bf16.msk.msra.mxu0 %vm2173_vm15, %v1963_v28  ;;  %vm479_vm9 = vmor %vm443_vm14, %vm463_vm4  ;;  %vm2771_vm4 = vcmask 105472   ;;  %vm467_vm15 = vcmp.eq.s32.totalorder %v427_v43, %v2092_v19 }
  0x3b   : > { %vm514_vm10 = vmor %vm478_vm7, %vm498_vm0  ;;  %1800 = vmatmul.mubr.msk.f32.gmra.mrb[8].mxu1 %vm2771_vm4, %v760_v37  ;;  %vm500_vm0 = vcmp.eq.s32.totalorder %v424_v34, %v2094_v20  ;;  %vm2774_vm7 = vmmov 0   ;;  %vm446_vm4 = vcmp.eq.s32.totalorder %v426_v41, %v2090_v18  ;;  %864 = vperm.xlu0 %1924, %v789_v0   ;;  %v773_v34 = vld [vmem:[%s2745_s4 + $0xb8] sm:$0xff]  ;;  %v774_v37 = vld [vmem:[%s2745_s4 + $0xc0] sm:$0xf] }
  0x3c   : > { %vm515_vm13 = vmor %vm479_vm9, %vm499_vm8  ;;  %1802 = vmatprep.mubr.msk.f32.mxu1 %vm2774_vm7, %v1960_v6  ;;  %vm501_vm9 = vcmp.eq.s32.totalorder %v425_v36, %v2094_v20  ;;  %869 = vperm.xlu1 %1925, %v790_v12   ;;  %v1372_v36 = vld [vmem:[%s2748_s7 + $0x18] sm:$0xff] }
  0x3d   : > { %vm2207_vm14 = vmpackc.low %vm515_vm13, %vm514_vm10 }
  0x3e   : > { %v2773_v42 = vsel %vm2207_vm14, 4294967295, %v2772_v42  ;;  %1723 = vmatprep.subr.msk.bf16.mxu0 %vm2207_vm14, %v1963_v28  ;;  %vm480_vm8 = vmor %vm444_vm11, %vm464_vm12  ;;  %vm466_vm11 = vcmp.eq.s32.totalorder %v426_v41, %v2092_v19  ;;  %vm2775_vm12 = vcmask 105472  }
  0x3f   : > { %1724 = vmatpush3.bf16.msk.msra.mxu0 %vm2207_vm14, %v1963_v28  ;;  %vm481_vm10 = vmor %vm445_vm5, %vm465_vm1  ;;  %1803 = vmatmul.mubr.msk.f32.gmra.mrb[10].mxu1 %vm2775_vm12, %v761_v44  ;;  %vm447_vm14 = vcmp.eq.s32.totalorder %v427_v43, %v2090_v18  ;;  %vm502_vm5 = vcmp.eq.s32.totalorder %v426_v41, %v2094_v20  ;;  %v1426_v41 = vld [vmem:[%s2749_s8 + $0x8] sm:$0xff]  ;;  %v1373_v44 = vld [vmem:[%s2748_s7 + $0x20] sm:$0xff] }
  0x40   : > { %vm516_vm13 = vmor %vm480_vm8, %vm500_vm0  ;;  %1805 = vmatprep.mubr.msk.f32.mxu1 %vm2774_vm7, %v1960_v6  ;;  %vm503_vm0 = vcmp.eq.s32.totalorder %v427_v43, %v2094_v20  ;;  %874 = vperm.xlu0 %1924, %v791_v10   ;;  %v1933_v43 = vld [vmem:[%s2743_s2 + $0x18] ss:$0 sps:$4 sm:$0x11]  }
  0x41   : > { %vm517_vm3 = vmor %vm481_vm10, %vm501_vm9 }
  0x42   : > { %vm2250_vm1 = vmpackc.low %vm517_vm3, %vm516_vm13  ;;  %vm448_vm13 = vcmp.eq.s32.totalorder %v428_v47, %v2090_v18 }
  0x43   : > { %1725 = vmatprep.subr.msk.bf16.mxu0 %vm2250_vm1, %v1963_v28  ;;  %vm482_vm3 = vmor %vm446_vm4, %vm466_vm11  ;;  %vm468_vm4 = vcmp.eq.s32.totalorder %v428_v47, %v2092_v19 }
  0x44   : > { %1726 = vmatpush3.bf16.msk.msra.mxu0 %vm2250_vm1, %v1963_v28  ;;  %vm483_vm8 = vmor %vm447_vm14, %vm467_vm15  ;;  %vm469_vm15 = vcmp.eq.s32.totalorder %v429_v50, %v2092_v19  ;;  %884 = vperm.xlu0 %1924, %v793_v13  }
  0x45   : > { %vm2778_vm9 = vmmov %vm2775_vm12  ;;  %vm449_vm12 = vcmp.eq.s32.totalorder %v429_v50, %v2090_v18 }
  0x46   : > { %1806 = vmatmul.mubr.msk.f32.gmra.mrb[12].mxu1 %vm2778_vm9, %v762_v48  ;;  %vm518_vm10 = vmor %vm482_vm3, %vm502_vm5  ;;  %vm504_vm5 = vcmp.eq.s32.totalorder %v428_v47, %v2094_v20  ;;  %v750_v47 = vld [vmem:[%s2745_s4] sm:$0xff]  ;;  %v1431_v48 = vld [vmem:[%s2749_s8 + $0x30] sm:$0x3] }
  0x47   : > { %1808 = vmatprep.mubr.msk.f32.mxu1 %vm2774_vm7, %v1960_v6  ;;  %vm519_vm11 = vmor %vm483_vm8, %vm503_vm0  ;;  %vm505_vm0 = vcmp.eq.s32.totalorder %v429_v50, %v2094_v20  ;;  %v751_v50 = vld [vmem:[%s2745_s4 + $0x8] sm:$0xff] }
  0x48   : > { %vm2286_vm14 = vmpackc.low %vm519_vm11, %vm518_vm10  ;;  %vm450_vm11 = vcmp.eq.s32.totalorder %v430_v54, %v2090_v18 }
  0x49   : > { %v2780_v55 = vsel %vm2286_vm14, 4294967295, %v2779_v55  ;;  %1727 = vmatprep.subr.msk.bf16.mxu0 %vm2286_vm14, %v1963_v28  ;;  %vm484_vm3 = vmor %vm448_vm13, %vm468_vm4  ;;  %vm470_vm13 = vcmp.eq.s32.totalorder %v430_v54, %v2092_v19 }
  0x4a   : > { %vm2781_vm8 = vmmov %vm2778_vm9  ;;  %1728 = vmatpush3.bf16.msk.msra.mxu0 %vm2286_vm14, %v1963_v28  ;;  %vm471_vm14 = vcmp.eq.s32.totalorder %v431_v56, %v2092_v19  ;;  %v1930_v19 = vld [vmem:[%s2743_s2] sm:$0xff]  }
  0x4b   : > { %1809 = vmatmul.mubr.msk.f32.gmra.mrb[14].mxu1 %vm2781_vm8, %v763_v53  ;;  %vm485_vm9 = vmor %vm449_vm12, %vm469_vm15  ;;  %vm451_vm8 = vcmp.eq.s32.totalorder %v431_v56, %v2090_v18  ;;  %vm506_vm15 = vcmp.eq.s32.totalorder %v430_v54, %v2094_v20  ;;  %v792_v18 = vld [vmem:[%s2746_s5 + $0x78] sm:$0xff]  ;;  %v754_v54 = vld [vmem:[%s2745_s4 + $0x20] sm:$0xff] }
  0x4c   : > { %1811 = vmatprep.mubr.msk.f32.mxu1 %vm2774_vm7, %v1960_v6  ;;  %vm520_vm10 = vmor %vm484_vm3, %vm504_vm5  ;;  %vm2784_vm5 = vcmask 105472   ;;  %879 = vperm.xlu1 %1925, %v792_v18   ;;  %v753_v53 = vld [vmem:[%s2745_s4 + $0x18] sm:$0xff] }
  0x4d   : > { %vm521_vm4 = vmor %vm485_vm9, %vm505_vm0  ;;  %vm507_vm0 = vcmp.eq.s32.totalorder %v431_v56, %v2094_v20  ;;  %v795_v20 = vld [vmem:[%s2746_s5 + $0x90] sm:$0xff] }
  0x4e   : > { %vm2322_vm12 = vmpackc.low %vm521_vm4, %vm520_vm10  ;;  %894 = vperm.xlu0 %1924, %v795_v20  }
  0x4f   : > { %1812 = vmatmul.mubr.msk.f32.gmra.mrb[16].mxu1 %vm2784_vm5, %v764_v59  ;;  %1729 = vmatprep.subr.msk.bf16.mxu0 %vm2322_vm12, %v1963_v28  ;;  %vm486_vm3 = vmor %vm450_vm11, %vm470_vm13 }
  0x50   : > { %1814 = vmatprep.mubr.msk.f32.mxu1 %vm2774_vm7, %v1960_v6  ;;  %1730 = vmatpush3.bf16.msk.msra.mxu0 %vm2322_vm12, %v1963_v28  ;;  %vm487_vm9 = vmor %vm451_vm8, %vm471_vm14 }
  0x51   : > { %vm522_vm10 = vmor %vm486_vm3, %vm506_vm15  ;;  %889 = vperm.xlu1 %1925, %v794_v22  }
  0x52   : > { %vm523_vm11 = vmor %vm487_vm9, %vm507_vm0  ;;  %904 = vperm.xlu0 %1924, %v797_v23   ;;  %vm2794_vm0 = vnez %v2780_v55  ;;  %v755_v55 = vld [vmem:[%s2745_s4 + $0x28] sm:$0xff] }
  0x53   : > { %vm2785_vm13 = vmmov %vm2784_vm5 }
  0x54   : > { %1815 = vmatmul.mubr.msk.f32.gmra.mrb[18].mxu1 %vm2785_vm13, %v765_v63  ;;  %vm2350_vm4 = vmpackc.low %vm523_vm11, %vm522_vm10  ;;  %vm2799_vm11 = vnez %v2763_v14  ;;  %v1374_v14 = vld [vmem:[%s2748_s7 + $0x28] sm:$0xff] }
  0x55   : > { %1817 = vmatprep.mubr.msk.f32.mxu1 %vm2774_vm7, %v1960_v6  ;;  %1731 = vmatprep.subr.msk.bf16.mxu0 %vm2350_vm4, %v1963_v28  ;;  %vm2788_vm14 = vmmov %vm2784_vm5 }
  0x56   : > { %1732 = vmatpush3.bf16.msk.msra.mxu0 %vm2350_vm4, %v1963_v28  ;;  %vm2789_vm8 = vmmov %vm2784_vm5  ;;  %899 = vperm.xlu1 %1925, %v796_v25  }
  0x57   : > { %1741 = vmatprep.subr.msk.bf16.mxu0 %vm2125_vm6, %v1963_v28  ;;  %vm2791_vm15 = vmmov %vm2784_vm5  ;;  %914 = vperm.xlu0 %1924, %v799_v26  }
  0x58   : > { %1818 = vmatmul.mubr.msk.f32.gmra.mrb[20].mxu1 %vm2788_vm14, %v766_v3  ;;  %vm2793_vm3 = vmmov %vm2784_vm5 }
  0x59   : > { %1820 = vmatprep.mubr.msk.f32.mxu1 %vm2774_vm7, %v1960_v6  ;;  %1734 = vmatmul.mubr.bf16.vlgmr.msra.gmra.mrb[0].mxu0 %v1927_v7  ;;  %vm2795_vm9 = vmmov %vm2793_vm3 }
  0x5a   : > { %1742 = vmatpush3.bf16.msk.msra.mxu0 %vm2125_vm6, %v1963_v28  ;;  %1737 = vmatprep.mubr.bf16.mxu0 %v1928_v9  ;;  %vm2790_vm6 = vnez %v2769_v35  ;;  %v1369_v35 = vld [vmem:[%s2748_s7] sm:$0xff] }
  0x5b   : > { %1743 = vmatprep.subr.msk.bf16.mxu0 %vm2149_vm2, %v1963_v28  ;;  %909 = vperm.xlu1 %1925, %v798_v29  }
  0x5c   : > { %1821 = vmatmul.mubr.msk.f32.gmra.mrb[22].mxu1 %vm2789_vm8, %v767_v11  ;;  %924 = vperm.xlu0 %1924, %v801_v30  }
  0x5d   : > { %1823 = vmatprep.mubr.msk.f32.mxu1 %vm2774_vm7, %v1960_v6 }
  0x5e   : > { %1744 = vmatpush3.bf16.msk.msra.mxu0 %vm2149_vm2, %v1963_v28  ;;  %vm2792_vm2 = vnez %v2773_v42  ;;  %v1425_v42 = vld [vmem:[%s2749_s8] sm:$0xff] }
  0x5f   : > { %1745 = vmatprep.subr.msk.bf16.mxu0 %vm2790_vm6, %v1963_v28  ;;  %919 = vperm.xlu1 %1925, %v800_v32  }
  0x60   : > { %1824 = vmatmul.mubr.msk.f32.gmra.mrb[24].mxu1 %vm2791_vm15, %v768_v15  ;;  %1383 = vperm.xlu0 %1924, %v1370_v33  }
  0x61   : > { %1826 = vmatprep.mubr.msk.f32.mxu1 %vm2774_vm7, %v1960_v6  ;;  %1738 = vmatmul.mubr.bf16.gmra.mrb[4].mxu0 %v1929_v17 }
  0x62   : > { %1746 = vmatpush3.bf16.msk.msra.mxu0 %vm2790_vm6, %v1963_v28  ;;  %1757 = vmatprep.mubr.bf16.mxu0 %v1930_v19 }
  0x63   : > { %1747 = vmatprep.subr.msk.bf16.mxu0 %vm2792_vm2, %v1963_v28  ;;  %1378 = vperm.xlu1 %1925, %v1369_v35  }
  0x64   : > { %1827 = vmatmul.mubr.msk.f32.gmra.mrb[26].mxu1 %vm2784_vm5, %v769_v21  ;;  %1393 = vperm.xlu0 %1924, %v1372_v36   ;;  %vm1479_vm5 = vcmask 1041408  }
  0x65   : > { %1829 = vmatprep.mubr.msk.f32.mxu1 %vm2774_vm7, %v1960_v6 }
  0x66   : > { %1748 = vmatpush3.bf16.msk.msra.mxu0 %vm2792_vm2, %v1963_v28  ;;  %vm1258_vm2 = vcmask 1043456  }
  0x67   : > { %1749 = vmatprep.subr.msk.bf16.mxu0 %vm2250_vm1, %v1963_v28  ;;  %1388 = vperm.xlu1 %1925, %v1371_v39  }
  0x68   : > { %1830 = vmatmul.mubr.msk.f32.gmra.mrb[28].mxu1 %vm2793_vm3, %v770_v24  ;;  %1439 = vperm.xlu0 %1924, %v1426_v41  }
  0x69   : > { %1832 = vmatprep.mubr.msk.f32.mxu1 %vm2774_vm7, %v1960_v6 }
  0x6a   : > { %1750 = vmatpush3.bf16.msk.msra.mxu0 %vm2250_vm1, %v1963_v28  ;;  %vm2796_vm1 = vmmov %vm2793_vm3 }
  0x6b   : > { %1751 = vmatprep.subr.msk.bf16.mxu0 %vm2794_vm0, %v1963_v28  ;;  %vm2797_vm10 = vmmov %vm2796_vm1  ;;  %1434 = vperm.xlu1 %1925, %v1425_v42  }
  0x6c   : > { %1833 = vmatmul.mubr.msk.f32.gmra.mrb[30].mxu1 %vm2795_vm9, %v771_v27  ;;  %vm2800_vm13 = vmmov %vm2796_vm1 }
  0x6d   : > { %1835 = vmatprep.mubr.msk.f32.mxu1 %vm2774_vm7, %v1960_v6  ;;  %vm2802_vm14 = vmmov %vm2796_vm1 }
  0x6e   : > { %1752 = vmatpush3.bf16.msk.msra.mxu0 %vm2794_vm0, %v1963_v28  ;;  %vm2803_vm8 = vmmov %vm2796_vm1 }
  0x6f   : > { %1753 = vmatprep.subr.msk.bf16.mxu0 %vm2322_vm12, %v1963_v28  ;;  %1398 = vperm.xlu1 %1925, %v1373_v44   ;;  %vm2804_vm6 = vmmov %vm2796_vm1 }
  0x70   : > { %1836 = vmatmul.mubr.msk.f32.gmra.mrb[32].mxu1 %vm2796_vm1, %v772_v31  ;;  %vm2805_vm15 = vmmov %vm2796_vm1 }
  0x71   : > { %1838 = vmatprep.mubr.msk.f32.mxu1 %vm2774_vm7, %v1960_v6 }
  0x72   : > { %1754 = vmatpush3.bf16.msk.msra.mxu0 %vm2322_vm12, %v1963_v28  ;;  %vm2798_vm12 = vmmov %vm2796_vm1 }
  0x73   : > { %1755 = vmatprep.subr.msk.bf16.mxu0 %vm2350_vm4, %v1963_v28  ;;  %1403 = vperm.xlu1 %1925, %v1374_v14  }
  0x74   : > { %1839 = vmatmul.mubr.msk.f32.gmra.mrb[34].mxu1 %vm2797_vm10, %v773_v34 }
  0x75   : > { %1841 = vmatprep.mubr.msk.f32.mxu1 %vm2774_vm7, %v1960_v6 }
  0x76   : > { %1756 = vmatpush3.bf16.msk.msra.mxu0 %vm2350_vm4, %v1963_v28  ;;  %v1427_v28 = vld [vmem:[%s2749_s8 + $0x10] sm:$0xff]  ;;  %vm2801_vm4 = vmmov %vm2796_vm1 }
  0x77   : > { %1844 = vmatprep.subr.bf16.mxu0 %v1958_v4  ;;  %1444 = vperm.xlu0 %1924, %v1427_v28  }
  0x78   : > { %1842 = vmatmul.mubr.msk.f32.gmra.mrb[36].mxu1 %vm2798_vm12, %v774_v37  ;;  %1408 = vperm.xlu1 %1925, %v1375_v46  }
  0x79   : > { %1758 = vmatmul.mubr.bf16.vlgmr.msra.gmra.mrb[0].mxu0 %v1931_v38 }
  0x7a   : > { %1761 = vmatprep.mubr.bf16.mxu0 %v1932_v40  ;;  %1847 = vmatpush3.bf16.msk.msra.mxu0 %vm2799_vm11, %v2083_v16  ;;  %v1429_v16 = vld [vmem:[%s2749_s8 + $0x20] sm:$0xff] }
  0x7b   : > { %1449 = vperm.xlu0 %1924, %v1428_v45  }
  0x7c   : > { %1459 = vperm.xlu1 %1925, %v1430_v49  }
  0x7f   : > { %1454 = vperm.xlu0 %1924, %v1429_v16  }
  0x80   : > { %1491 = vperm.xlu1 %1925, %v1488_v51  }
  0x81   : > { %1762 = vmatmul.mubr.bf16.gmra.mrb[4].mxu0 %v1933_v43  ;;  %v1223_v43 = vld [vmem:[%s2747_s6 + $0x8] sm:$0xff] }
  0x82   : > { %1769 = vmatprep.mubr.msk.f32.mxu0 %vm2774_vm7, %v1960_v6 }
  0x83   : > { %1464 = vperm.xlu0 %1924, %v1431_v48  }
  0x89   : > { %1770 = vmatmul.mubr.msk.f32.vlgmr.msra.gmra.mrb[8].mxu0 %vm2800_vm13, %v750_v47 }
  0x8a   : > { %1772 = vmatprep.mubr.msk.f32.mxu0 %vm2774_vm7, %v1960_v6 }
  0x8d   : > { %1773 = vmatmul.mubr.msk.f32.gmra.mrb[10].mxu0 %vm2801_vm4, %v751_v50 }
  0x8e   : > { %1775 = vmatprep.mubr.msk.f32.mxu0 %vm2774_vm7, %v1960_v6 }
  0x91   : > { %1776 = vmatmul.mubr.msk.f32.gmra.mrb[12].mxu0 %vm2802_vm14, %v752_v52 }
  0x92   : > { %1778 = vmatprep.mubr.msk.f32.mxu0 %vm2774_vm7, %v1960_v6 }
  0x95   : > { %1779 = vmatmul.mubr.msk.f32.gmra.mrb[14].mxu0 %vm2803_vm8, %v753_v53 }
  0x96   : > { %1781 = vmatprep.mubr.msk.f32.mxu0 %vm2774_vm7, %v1960_v6 }
  0x99   : > { %1782 = vmatmul.mubr.msk.f32.gmra.mrb[16].mxu0 %vm2804_vm6, %v754_v54 }
  0x9a   : > { %1784 = vmatprep.mubr.msk.f32.mxu0 %vm2774_vm7, %v1960_v6  ;;  %vm1236_vm7 = vcmask 556032  }
  0x9b   : > { %1657 = vmatprep.mubr.msk.f32.mxu1 %vm1236_vm7, %v1223_v43 }
  0x9d   : > { %1785 = vmatmul.mubr.msk.f32.gmra.mrb[18].mxu0 %vm2805_vm15, %v755_v55 }
  0xa0   : > { %v2601_v56 = vpop.permute.xlu0 %804 }
  0xa1   : > { %v2603_v57 = vpop.permute.xlu1 %814 }
  0xa4   : > { %v2605_v58 = vpop.permute.xlu0 %809 }
  0xa5   : > { %v2607_v59 = vpop.permute.xlu1 %819 }
  0xaa   : > { %v2609_v60 = vpop.permute.xlu0 %824  ;;  %v2611_v61 = vpop.permute.xlu1 %829 }
  0xae   : > { %v835_v63 = vpop.permute.xlu0 %834 }
  0xaf   : > { %v840_v2 = vpop.permute.xlu1 %839 }
  0xb2   : > { %v845_v12 = vpop.permute.xlu0 %844 }
  0xb3   : > { %v850_v19 = vpop.permute.xlu1 %849 }
  0xb6   : > { %v855_v25 = vpop.permute.xlu0 %854 }
  0xb7   : > { %v860_v31 = vpop.permute.xlu1 %859 }
  0xba   : > { %v865_v37 = vpop.permute.xlu0 %864 }
  0xbb   : > { %v870_v42 = vpop.permute.xlu1 %869 }
  0xbf   : > { %v875_v46 = vpop.permute.xlu0 %874 }
  0xcb   : > { %v880_v51 = vpop.permute.xlu1 %879 }
  0xf8   : > { %v1103_v62 = vpop.f32.mrb[0].mxu1 }
  0xf9   : > { %v1789_v0 = vpop.f32.mrb[1].mxu1  ;;  %v1104_v1 = vadd.f32 %v1103_v62, %v835_v63  ;;  %v885_v63 = vpop.permute.xlu0 %884 }
  0xfb   : > { %v1203_v7 = vmax.f32 %v1104_v1, 0.0 }
  0xfc   : > { %v1108_v3 = vpop.f32.mrb[2].mxu1 }
  0xfd   : > { %v1109_v9 = vadd.f32 %v1108_v3, %v840_v2  ;;  %v1792_v10 = vpop.f32.mrb[3].mxu1 }
  0xff   : > { %v1204_v11 = vmax.f32 %v1109_v9, 0.0 }
 0x100   : > { %v1113_v13 = vpop.f32.mrb[4].mxu1 }
 0x101   : > { %v2613_v15 = vpack.c.bf16 %v1204_v11, %v1203_v7  ;;  %v1114_v17 = vadd.f32 %v1113_v13, %v845_v12  ;;  %v1795_v18 = vpop.f32.mrb[5].mxu1  ;;  %v890_v7 = vpop.permute.xlu1 %889 }
 0x103   : > { %v1205_v21 = vmax.f32 %v1114_v17, 0.0  ;;  %v895_v17 = vpop.permute.xlu0 %894 }
 0x10a   : > { %v1118_v20 = vpop.f32.mrb[6].mxu1 }
 0x10b   : > { %v1119_v22 = vadd.f32 %v1118_v20, %v850_v19  ;;  %v1798_v23 = vpop.f32.mrb[7].mxu1 }
 0x10d   : > { %v1206_v24 = vmax.f32 %v1119_v22, 0.0  ;;  %v900_v22 = vpop.permute.xlu1 %899 }
 0x10e   : > { %v1123_v26 = vpop.f32.mrb[8].mxu1 }
 0x10f   : > { %v2615_v27 = vpack.c.bf16 %v1206_v24, %v1205_v21  ;;  %v1124_v29 = vadd.f32 %v1123_v26, %v855_v25  ;;  %v1801_v30 = vpop.f32.mrb[9].mxu1 }
 0x110   : > { %v905_v30 = vpop.permute.xlu0 %904 }
 0x111   : > { %v1207_v33 = vmax.f32 %v1124_v29, 0.0 }
 0x112   : > { %v1128_v32 = vpop.f32.mrb[10].mxu1 }
 0x113   : > { %v1129_v34 = vadd.f32 %v1128_v32, %v860_v31  ;;  %v1804_v35 = vpop.f32.mrb[11].mxu1 }
 0x114   : > { %v910_v35 = vpop.permute.xlu1 %909 }
 0x115   : > { %v1208_v36 = vmax.f32 %v1129_v34, 0.0 }
 0x117   : > { %v2617_v39 = vpack.c.bf16 %v1208_v36, %v1207_v33 }
 0x119   : > { %v1133_v38 = vpop.f32.mrb[12].mxu1 }
 0x11a   : > { %v1134_v40 = vadd.f32 %v1133_v38, %v865_v37  ;;  %v1807_v41 = vpop.f32.mrb[13].mxu1 }
 0x11c   : > { %v1209_v44 = vmax.f32 %v1134_v40, 0.0 }
 0x11e   : > { %v1138_v28 = vpop.f32.mrb[14].mxu1 }
 0x11f   : > { %v1139_v45 = vadd.f32 %v1138_v28, %v870_v42  ;;  %v1810_v14 = vpop.f32.mrb[15].mxu1  ;;  %v915_v42 = vpop.permute.xlu0 %914 }
 0x120   : > { %v920_v14 = vpop.permute.xlu1 %919 }
 0x121   : > { %v1210_v16 = vmax.f32 %v1139_v45, 0.0 }
 0x122   : > { %v1143_v47 = vpop.f32.mrb[16].mxu1 }
 0x123   : > { %v2623_v48 = vpack.c.bf16 %v1210_v16, %v1209_v44  ;;  %v1144_v49 = vadd.f32 %v1143_v47, %v875_v46  ;;  %v1813_v50 = vpop.f32.mrb[17].mxu1 }
 0x125   : > { %v1211_v53 = vmax.f32 %v1144_v49, 0.0 }
 0x127   : > { %v1148_v52 = vpop.f32.mrb[18].mxu1 }
 0x128   : > { %v1149_v54 = vadd.f32 %v1148_v52, %v880_v51  ;;  %v1816_v55 = vpop.f32.mrb[19].mxu1 }
 0x12a   : > { %v1212_v62 = vmax.f32 %v1149_v54, 0.0 }
 0x12b   : > { %v1153_v0 = vpop.f32.mrb[20].mxu1 }
 0x12c   : > { %v2625_v1 = vpack.c.bf16 %v1212_v62, %v1211_v53  ;;  %v1154_v2 = vadd.f32 %v1153_v0, %v885_v63  ;;  %v1819_v3 = vpop.f32.mrb[21].mxu1 }
 0x12e   : > { %v1213_v10 = vmax.f32 %v1154_v2, 0.0 }
 0x12f   : > { %v1158_v9 = vpop.f32.mrb[22].mxu1 }
 0x130   : > { %v1159_v11 = vadd.f32 %v1158_v9, %v890_v7  ;;  %v1822_v12 = vpop.f32.mrb[23].mxu1 }
 0x132   : > { %v1214_v13 = vmax.f32 %v1159_v11, 0.0 }
 0x133   : > { %v1163_v18 = vpop.f32.mrb[24].mxu1 }
 0x134   : > { %v2627_v19 = vpack.c.bf16 %v1214_v13, %v1213_v10  ;;  %v1164_v20 = vadd.f32 %v1163_v18, %v895_v17  ;;  %v1825_v21 = vpop.f32.mrb[25].mxu1 }
 0x136   : > { %v1215_v24 = vmax.f32 %v1164_v20, 0.0 }
 0x137   : > { %v1168_v23 = vpop.f32.mrb[26].mxu1 }
 0x138   : > { %v1169_v25 = vadd.f32 %v1168_v23, %v900_v22  ;;  %v1828_v26 = vpop.f32.mrb[27].mxu1 }
 0x13a   : > { %v1216_v29 = vmax.f32 %v1169_v25, 0.0 }
 0x13b   : > { %v1173_v31 = vpop.f32.mrb[28].mxu1 }
 0x13c   : > { %v2629_v32 = vpack.c.bf16 %v1216_v29, %v1215_v24  ;;  %v1174_v33 = vadd.f32 %v1173_v31, %v905_v30  ;;  %v1831_v34 = vpop.f32.mrb[29].mxu1 }
 0x13e   : > { %v1217_v37 = vmax.f32 %v1174_v33, 0.0 }
 0x13f   : > { %v1178_v36 = vpop.f32.mrb[30].mxu1 }
 0x140   : > { %v1179_v38 = vadd.f32 %v1178_v36, %v910_v35  ;;  %v1834_v40 = vpop.f32.mrb[31].mxu1 }
 0x142   : > { %v1218_v41 = vmax.f32 %v1179_v38, 0.0 }
 0x143   : > { %v1183_v28 = vpop.f32.mrb[32].mxu1 }
 0x144   : > { %v2631_v43 = vpack.c.bf16 %v1218_v41, %v1217_v37  ;;  %v1184_v44 = vadd.f32 %v1183_v28, %v915_v42  ;;  %v1837_v45 = vpop.f32.mrb[33].mxu1  ;;  %v1233_v41 = vld [vmem:[%s2747_s6 + $0x58] sm:$0xff]  ;;  %v1232_v42 = vld [vmem:[%s2747_s6 + $0x50] sm:$0xff]  ;;  %v1235_v28 = vld [vmem:[%s2747_s6 + $0x68] sm:$0x3] }
 0x146   : > { %v1219_v46 = vmax.f32 %v1184_v44, 0.0  ;;  %v1379_v44 = vpop.permute.xlu1 %1378 }
 0x147   : > { %v1188_v16 = vpop.f32.mrb[34].mxu1 }
 0x148   : > { %v1189_v47 = vadd.f32 %v1188_v16, %v920_v14  ;;  %v1840_v49 = vpop.f32.mrb[35].mxu1 }
 0x14a   : > { %v1220_v50 = vmax.f32 %v1189_v47, 0.0  ;;  %v1389_v14 = vpop.permute.xlu1 %1388 }
 0x14b   : > { %v1193_v51 = vpop.f32.mrb[36].mxu1 }
 0x14c   : > { %v1882_v52 = vpack.c.bf16 %v1220_v50, %v1219_v46  ;;  %v1843_v53 = vpop.f32.mrb[37].mxu1  ;;  %v2633_v54 = vpop.f32.mrb[0].mxu0 }
 0x14d   : > { %v2635_v55 = vpop.f32.mrb[1].mxu0 }
 0x14e   : > { %v2637_v62 = vpop.f32.mrb[2].mxu0  ;;  %v1435_v50 = vpop.permute.xlu1 %1434 }
 0x14f   : > { %v2639_v63 = vpop.f32.mrb[3].mxu0 }
 0x154   : > { %v2641_v0 = vpop.f32.mrb[4].mxu0 }
 0x155   : > { %v2643_v2 = vpop.f32.mrb[5].mxu0 }
 0x156   : > { %v1764_v3 = vpop.f32.mrb[6].mxu0 }
 0x157   : > { %v2645_v7 = vpop.f32.mrb[7].mxu0 }
 0x15c   : > { %v1073_v9 = vpop.f32.mrb[8].mxu0 }
 0x15d   : > { %v1771_v10 = vpop.f32.mrb[9].mxu0  ;;  %v1074_v11 = vadd.f32 %v1073_v9, %v2601_v56 }
 0x15f   : > { %v1197_v18 = vmax.f32 %v1074_v11, 0.0 }
 0x160   : > { %v1078_v12 = vpop.f32.mrb[10].mxu0 }
 0x161   : > { %v1079_v13 = vadd.f32 %v1078_v12, %v2605_v58  ;;  %v1774_v17 = vpop.f32.mrb[11].mxu0  ;;  %v1399_v12 = vpop.permute.xlu1 %1398 }
 0x163   : > { %v1198_v20 = vmax.f32 %v1079_v13, 0.0 }
 0x164   : > { %v1083_v21 = vpop.f32.mrb[12].mxu0 }
 0x165   : > { %v1849_v22 = vpack.c.bf16 %v1198_v20, %v1197_v18  ;;  %v1777_v23 = vpop.f32.mrb[13].mxu0  ;;  %v1084_v24 = vadd.f32 %v1083_v21, %v2603_v57 }
 0x167   : > { %1850 = vmatpush1.bf16.msra.mxu1 %v1849_v22  ;;  %v1199_v30 = vmax.f32 %v1084_v24, 0.0 }
 0x168   : > { %v1088_v25 = vpop.f32.mrb[14].mxu0  ;;  %1851 = vmatprep.subr.bf16.mxu1 %v1958_v4 }
 0x169   : > { %v1089_v26 = vadd.f32 %v1088_v25, %v2607_v59  ;;  %v1780_v29 = vpop.f32.mrb[15].mxu0  ;;  %v925_v59 = vpop.permute.xlu0 %924 }
 0x16b   : > { %v1200_v56 = vmax.f32 %v1089_v26, 0.0 }
 0x16c   : > { %v1093_v31 = vpop.f32.mrb[16].mxu0 }
 0x16d   : > { %v1852_v33 = vpack.c.bf16 %v1200_v56, %v1199_v30  ;;  %v1783_v58 = vpop.f32.mrb[17].mxu0  ;;  %v1094_v34 = vadd.f32 %v1093_v31, %v2609_v60  ;;  %v1194_v60 = vadd.f32 %v1193_v51, %v925_v59  ;;  %v1384_v45 = vpop.permute.xlu0 %1383 }
 0x16f   : > { %1853 = vmatpush1.bf16.msra.mxu1 %v1852_v33  ;;  %v1201_v37 = vmax.f32 %v1094_v34, 0.0 }
 0x170   : > { %v1098_v35 = vpop.f32.mrb[18].mxu0  ;;  %1854 = vmatprep.subr.bf16.mxu1 %v1958_v4 }
 0x171   : > { %v1099_v57 = vadd.f32 %v1098_v35, %v2611_v61  ;;  %v1786_v36 = vpop.f32.mrb[19].mxu0  ;;  %v1221_v61 = vmax.f32 %v1194_v60, 0.0  ;;  %v1394_v16 = vpop.permute.xlu0 %1393 }
 0x173   : > { %v1202_v38 = vmax.f32 %v1099_v57, 0.0 }
 0x175   : > { %v1855_v40 = vpack.c.bf16 %v1202_v38, %v1201_v37 }
 0x177   : > { %1856 = vmatpush1.bf16.msra.mxu1 %v1855_v40 }
 0x178   : > { %1857 = vmatprep.subr.bf16.mxu1 %v1958_v4 }
 0x17b   : > { %1859 = vmatpush1.bf16.msra.mxu1 %v2613_v15  ;;  %v1222_v15 = vld [vmem:[%s2747_s6] sm:$0xff] }
 0x17c   : > { %1860 = vmatprep.subr.bf16.mxu1 %v1958_v4 }
 0x17f   : > { %1862 = vmatpush1.bf16.msra.mxu1 %v2615_v27  ;;  %v1225_v27 = vld [vmem:[%s2747_s6 + $0x18] sm:$0xff] }
 0x180   : > { %1863 = vmatprep.subr.bf16.mxu1 %v1958_v4 }
 0x183   : > { %1865 = vmatpush1.bf16.msra.mxu1 %v2617_v39  ;;  %v1226_v39 = vld [vmem:[%s2747_s6 + $0x20] sm:$0xff] }
 0x184   : > { %1866 = vmatprep.subr.bf16.mxu1 %v1958_v4 }
 0x187   : > { %1868 = vmatpush1.bf16.msra.mxu1 %v2623_v48  ;;  %v1229_v48 = vld [vmem:[%s2747_s6 + $0x38] sm:$0xff] }
 0x188   : > { %1869 = vmatprep.subr.bf16.mxu1 %v1958_v4 }
 0x18b   : > { %1871 = vmatpush1.bf16.msra.mxu1 %v2625_v1  ;;  %v1228_v1 = vld [vmem:[%s2747_s6 + $0x30] sm:$0xff] }
 0x18c   : > { %1872 = vmatprep.subr.bf16.mxu1 %v1958_v4 }
 0x18f   : > { %1874 = vmatpush1.bf16.msra.mxu1 %v2627_v19  ;;  %v1231_v19 = vld [vmem:[%s2747_s6 + $0x48] sm:$0xff] }
 0x190   : > { %1875 = vmatprep.subr.bf16.mxu1 %v1958_v4 }
 0x193   : > { %1877 = vmatpush1.bf16.msra.mxu1 %v2629_v32  ;;  %v1230_v32 = vld [vmem:[%s2747_s6 + $0x40] sm:$0xff] }
 0x194   : > { %1878 = vmatprep.subr.bf16.mxu1 %v1958_v4 }
 0x197   : > { %1880 = vmatpush1.bf16.msra.mxu1 %v2631_v43  ;;  %v1234_v43 = vld [vmem:[%s2747_s6 + $0x60] sm:$0x3] }
 0x198   : > { %1881 = vmatprep.subr.bf16.mxu1 %v1958_v4  ;;  %v1224_v4 = vld [vmem:[%s2747_s6 + $0x10] sm:$0xff] }
 0x19b   : > { %1883 = vmatpush1.bf16.msra.mxu1 %v1882_v52  ;;  %v1440_v52 = vpop.permute.xlu0 %1439 }
 0x19c   : > { %1310 = vmatprep.subr.mxu1 %v1960_v6  ;;  %v1227_v6 = vld [vmem:[%s2747_s6 + $0x28] sm:$0xff] }
 0x19f   : > { %1656 = vmatpush1.msk.msra.mxu1 %vm1258_vm2, %v1221_v61  ;;  %v1445_v21 = vpop.permute.xlu0 %1444 }
 0x1a0   : > { %1327 = vmatmul.mubr.f32.vlgmr.msra.gmra.mrb[38].mxu1 %v1222_v15 }
 0x1a1   : > { %1658 = vmatprep.mubr.msk.f32.mxu1 %vm1236_vm7, %v1225_v27 }
 0x1a3   : > { %v1450_v33 = vpop.permute.xlu0 %1449 }
 0x1a4   : > { %1332 = vmatmul.mubr.f32.gmra.mrb[40].mxu1 %v1224_v4 }
 0x1a5   : > { %1659 = vmatprep.mubr.msk.f32.mxu1 %vm1236_vm7, %v1227_v6 }
 0x1a7   : > { %v1455_v15 = vpop.permute.xlu0 %1454 }
 0x1a8   : > { %1337 = vmatmul.mubr.f32.gmra.mrb[42].mxu1 %v1226_v39 }
 0x1a9   : > { %1660 = vmatprep.mubr.msk.f32.mxu1 %vm1236_vm7, %v1229_v48 }
 0x1ac   : > { %1342 = vmatmul.mubr.f32.gmra.mrb[44].mxu1 %v1228_v1 }
 0x1ad   : > { %1661 = vmatprep.mubr.msk.f32.mxu1 %vm1236_vm7, %v1231_v19 }
 0x1b0   : > { %1347 = vmatmul.mubr.f32.gmra.mrb[46].mxu1 %v1230_v32 }
 0x1b1   : > { %1662 = vmatprep.mubr.msk.f32.mxu1 %vm1236_vm7, %v1233_v41 }
 0x1b4   : > { %1352 = vmatmul.mubr.f32.gmra.mrb[48].mxu1 %v1232_v42 }
 0x1b5   : > { %1663 = vmatprep.mubr.msk.f32.mxu1 %vm1236_vm7, %v1235_v28 }
 0x1b8   : > { %1357 = vmatmul.mubr.f32.gmra.mrb[50].mxu1 %v1234_v43  ;;  %v1465_v43 = vpop.permute.xlu0 %1464 }
 0x273   : > { %v1328_v46 = vpop.f32.mrb[38].mxu1 }
 0x274   : > { %v1362_v47 = vadd.f32 %v1328_v46, %v2635_v55  ;;  %v1330_v49 = vpop.f32.mrb[39].mxu1 }
 0x276   : > { %v1411_v51 = vadd.f32 %v1379_v44, %v1362_v47 }
 0x277   : > { %v1333_v53 = vpop.f32.mrb[40].mxu1 }
 0x278   : > { %v1363_v3 = vadd.f32 %v1333_v53, %v2639_v63  ;;  %v1335_v9 = vpop.f32.mrb[41].mxu1  ;;  %v1418_v10 = vmax.f32 %v1411_v51, 0.0  ;;  %v1404_v63 = vpop.permute.xlu1 %1403 }
 0x27a   : > { %v1412_v11 = vadd.f32 %v1384_v45, %v1363_v3  ;;  %v1467_v22 = vmul.f32 %v1435_v50, %v1418_v10 }
 0x27b   : > { %v1338_v13 = vpop.f32.mrb[42].mxu1 }
 0x27c   : > { %v1419_v17 = vmax.f32 %v1412_v11, 0.0  ;;  %v1364_v18 = vadd.f32 %v2633_v54, %v1338_v13  ;;  %v1340_v20 = vpop.f32.mrb[43].mxu1  ;;  %v1409_v38 = vpop.permute.xlu1 %1408 }
 0x27e   : > { %v1468_v23 = vmul.f32 %v1440_v52, %v1419_v17  ;;  %v1413_v55 = vadd.f32 %v1389_v14, %v1364_v18 }
 0x27f   : > { %v1343_v24 = vpop.f32.mrb[44].mxu1 }
 0x280   : > { %v1474_v25 = vadd.f32 %v1468_v23, %v1467_v22  ;;  %v1420_v26 = vmax.f32 %v1413_v55, 0.0  ;;  %v1365_v29 = vadd.f32 %v2637_v62, %v1343_v24  ;;  %v1345_v30 = vpop.f32.mrb[45].mxu1 }
 0x282   : > { %v1469_v56 = vmul.f32 %v1445_v21, %v1420_v26  ;;  %v1414_v31 = vadd.f32 %v1394_v16, %v1365_v29 }
 0x283   : > { %v1348_v58 = vpop.f32.mrb[46].mxu1 }
 0x284   : > { %v1475_v34 = vadd.f32 %v1474_v25, %v1469_v56  ;;  %v1421_v35 = vmax.f32 %v1414_v31, 0.0  ;;  %v1366_v54 = vadd.f32 %v1348_v58, %v2643_v2  ;;  %v1350_v57 = vpop.f32.mrb[47].mxu1  ;;  %v1460_v2 = vpop.permute.xlu1 %1459 }
 0x286   : > { %v1470_v36 = vmul.f32 %v1450_v33, %v1421_v35  ;;  %v1415_v37 = vadd.f32 %v1399_v12, %v1366_v54 }
 0x287   : > { %v1353_v40 = vpop.f32.mrb[48].mxu1 }
 0x288   : > { %v1476_v59 = vadd.f32 %v1475_v34, %v1470_v36  ;;  %v1422_v60 = vmax.f32 %v1415_v37, 0.0  ;;  %v1367_v61 = vadd.f32 %v1353_v40, %v2645_v7  ;;  %v1355_v62 = vpop.f32.mrb[49].mxu1  ;;  %v1492_v49 = vpop.permute.xlu1 %1491 }
 0x28a   : > { %v1471_v27 = vmul.f32 %v1455_v15, %v1422_v60  ;;  %v1416_v4 = vadd.f32 %v1404_v63, %v1367_v61 }
 0x28b   : > { %v1358_v6 = vpop.f32.mrb[50].mxu1 }
 0x28c   : > { %v1477_v39 = vadd.f32 %v1476_v59, %v1471_v27  ;;  %v1423_v48 = vmax.f32 %v1416_v4, 0.0  ;;  %v1368_v1 = vadd.f32 %v2641_v0, %v1358_v6  ;;  %v1360_v19 = vpop.f32.mrb[51].mxu1  ;;  %v1497_v0 = vrot.slane %v1492_v49, %v434_v8 }
 0x28e   : > { %v1472_v32 = vmul.f32 %v1460_v2, %v1423_v48  ;;  %v1417_v41 = vadd.f32 %v1409_v38, %v1368_v1 }
 0x290   : > { %v1478_v42 = vadd.f32 %v1477_v39, %v1472_v32  ;;  %v1424_v28 = vmax.f32 %v1417_v41, 0.0 }
 0x292   : > { %v1473_v44 = vmul.f32 %v1465_v43, %v1424_v28 }
 0x294   : > { %v1480_v7 = vsel %vm1479_vm5, %v1473_v44, 0.0 }
 0x295   : > { %v1481_v45 = vadd.f32 %v1480_v7, %v1478_v42 }
 0x297   : > { %v1482_v14 = vrot.slane %v1481_v45, 4 }
 0x299   : > { %v1483_v16 = vadd.f32 %v1482_v14, %v1481_v45 }
 0x29b   : > { %v1484_v46 = vrot.slane %v1483_v16, 2 }
 0x29d   : > { %v1485_v47 = vadd.f32 %v1484_v46, %v1483_v16 }
 0x29f   : > { %v1486_v50 = vrot.slane %v1485_v47, 1 }
 0x2a1   : > { %v1487_v51 = vadd.f32 %v1486_v50, %v1485_v47 }
 0x2a3   : > { %v1498_v52 = vadd.f32 %v1497_v0, %v1487_v51 }
 0x2a5   : > { %1499 = vst [vmem:[%s412_s23] sm:$0x1] %v1498_v52 }
 0x2a6 PF: > { %p19_p9 = scmp.ge.s32.totalorder %s2039_s18, 4   ;;  %s2806_s15 = smov %s1952_s16 }
 0x2a7   : > { %s2807_s16 = smov %s2048_s21  ;;  %s2808_s17 = smov %s2039_s18 }
 0x2a8   :  { %21 = sbr.rel (!%p19_p9) target bundleno = 5 (0x5), region = 136 }

</bundles_post_ra>
